<compile_context>
chip_gen: v6e
topology: v6e:2x2x1
jax: 0.10.0
libtpu: 0.0.40
codegen_flags: <defaults>
</compile_context>

<pallas_src>
import functools

import jax
import jax.numpy as jnp
from jax.experimental import pallas as pl
from jax.experimental.pallas import tpu as pltpu


def _round_up(x, m):
    return ((x + m - 1) // m) * m


# ---------------------------------------------------------------------------
# Kernel
# ---------------------------------------------------------------------------
def _critic_kernel(x_ref, w1_ref, b1_ref, w2_ref, b2_ref, wq_ref, bq_ref, q_ref):
    """One batch tile: q = relu(relu(x@W1+b1)@W2+b2) . wq + bq."""
    # fc1: single MXU push over the (zero-padded) concat([state, action]).
    h1 = jnp.dot(x_ref[...], w1_ref[...], preferred_element_type=jnp.float32)
    h1 = jnp.maximum(h1 + b1_ref[...], 0.0)                     # ReLU (f32)
    # fc2: bf16 operands, f32 accumulation.
    h2 = jnp.dot(h1.astype(w2_ref.dtype), w2_ref[...],
                 preferred_element_type=jnp.float32)
    h2 = jnp.maximum(h2 + b2_ref[...], 0.0)                     # ReLU (f32)
    # q head (N=1): VPU multiply + lane reduction (MXU would waste 255/256 cols).
    q = jnp.sum(h2 * wq_ref[...], axis=-1, keepdims=True) + bq_ref[...]
    q_ref[...] = q.astype(q_ref.dtype)


# ---------------------------------------------------------------------------
# Parameter init (torch-style) and one-time kernel-layout prepare
# ---------------------------------------------------------------------------
def init_critic_params(key, input_dims, n_actions, fc1_dims=256, fc2_dims=256):
    """PyTorch-style Linear init: U(-1/sqrt(fan_in), 1/sqrt(fan_in)).
    Weights stored as [in_features, out_features] (transposed vs. torch)."""
    d_in = input_dims[0] + n_actions
    keys = jax.random.split(key, 6)

    def linear(kw, kb, fan_in, fan_out):
        bound = 1.0 / jnp.sqrt(jnp.float32(fan_in))
        w = jax.random.uniform(kw, (fan_in, fan_out), jnp.float32, -bound, bound)
        b = jax.random.uniform(kb, (fan_out,), jnp.float32, -bound, bound)
        return w, b

    w1, b1 = linear(keys[0], keys[1], d_in, fc1_dims)
    w2, b2 = linear(keys[2], keys[3], fc1_dims, fc2_dims)
    wq, bq = linear(keys[4], keys[5], fc2_dims, 1)
    return {"w1": w1, "b1": b1, "w2": w2, "b2": b2, "wq": wq, "bq": bq}


def prepare_critic_params(params, d_state, d_act):
    """One-time conversion to the kernel layout:
       * w1 zero-padded along K to a multiple of 16 (bf16 sublane pack), bf16
       * w2 cast to bf16
       * biases kept in f32 as row vectors
       * wq reshaped to a [1, fc2] f32 row (consumed by the VPU reduction)."""
    w1, b1, w2, b2, wq, bq = (params["w1"], params["b1"], params["w2"],
                              params["b2"], params["wq"], params["bq"])
    d_in = d_state + d_act
    assert w1.shape[0] == d_in
    k_pad = max(16, _round_up(d_in, 16))
    w1_p = jnp.zeros((k_pad, w1.shape[1]), jnp.float32).at[:d_in, :].set(w1)
    return {
        "w1": w1_p.astype(jnp.bfloat16),
        "b1": b1.reshape(1, -1).astype(jnp.float32),
        "w2": w2.astype(jnp.bfloat16),
        "b2": b2.reshape(1, -1).astype(jnp.float32),
        "wq_row": wq.reshape(1, -1).astype(jnp.float32),
        "bq": bq.reshape(1, 1).astype(jnp.float32),
    }


# ---------------------------------------------------------------------------
# Forward wrapper (jit'd so concat/pad/cast fuse with the pallas_call dispatch)
# ---------------------------------------------------------------------------
@functools.partial(jax.jit, static_argnames=("batch_tile",))
def critic_forward(state, action, prepared, *, batch_tile=1024):
    """state: [B, D_state], action: [B, D_act] -> q: [B, 1] (f32)."""
    B, d_state = state.shape
    _, d_act = action.shape
    d_in = d_state + d_act

    w1 = prepared["w1"]
    k_pad, fc1 = w1.shape
    fc2 = prepared["w2"].shape[1]

    # concat([state, action]) in bf16, zero-pad K to the prepared width.
    # (Inside this jit the concat + pad + cast fuse into one small XLA fusion.)
    x = jnp.concatenate([state, action], axis=1).astype(jnp.bfloat16)
    if k_pad > d_in:
        x = jnp.pad(x, ((0, 0), (0, k_pad - d_in)))

    # ---- Batch tiling ------------------------------------------------------
    # tb is a multiple of 16; whenever the batch spans more than one minimal
    # tile we force the grid to have >= 2 steps so both v7x TensorCores are
    # used, capped at `batch_tile` rows per tile for large B.
    b16 = _round_up(B, 16)
    bt = max(16, _round_up(int(batch_tile), 16))
    half = max(16, _round_up(pl.cdiv(b16, 2), 16))
    tb = min(bt, half)
    b_pad = _round_up(b16, tb)
    if b_pad > B:
        x = jnp.pad(x, ((0, b_pad - B), (0, 0)))
    grid = (b_pad // tb,)
    const = lambda i: (0, 0)  # weights/biases: same block every grid step

    # ---- Scheduling hints ---------------------------------------------------
    flops = 2 * b_pad * (k_pad * fc1 + fc1 * fc2 + fc2)
    bytes_accessed = int(
        b_pad * k_pad * 2                                     # bf16 x in
        + w1.size * 2 + prepared["w2"].size * 2               # bf16 weights
        + (fc1 + fc2 + fc2 + 1) * 4                           # f32 biases + wq
        + b_pad * 4                                           # f32 output
    )

    # Raise the scoped-VMEM limit only if a very large batch tile needs it
    # (default tb <= 1024 stays comfortably under every generation's default).
    vmem_est = int(
        2 * tb * k_pad * 2          # double-buffered x tiles (bf16)
        + 2 * tb * 4                # double-buffered out tiles (f32)
        + w1.size * 2 + prepared["w2"].size * 2 + (fc1 + fc2 + fc2 + 1) * 4
        + 3 * tb * fc1 * 4          # h1/h2/q f32 intermediates (headroom)
    )
    if vmem_est > 12 * 2**20:
        compiler_params = pltpu.CompilerParams(
            dimension_semantics=("parallel",),
            vmem_limit_bytes=int(min(2 * vmem_est, 64 * 2**20)))
    else:
        compiler_params = pltpu.CompilerParams(
            dimension_semantics=("parallel",))

    q = pl.pallas_call(
        _critic_kernel,
        out_shape=jax.ShapeDtypeStruct((b_pad, 1), jnp.float32),
        grid=grid,
        in_specs=[
            pl.BlockSpec((tb, k_pad), lambda i: (i, 0)),   # x tile (pipelined)
            pl.BlockSpec((k_pad, fc1), const),             # w1 (VMEM-resident)
            pl.BlockSpec((1, fc1), const),                 # b1
            pl.BlockSpec((fc1, fc2), const),               # w2 (VMEM-resident)
            pl.BlockSpec((1, fc2), const),                 # b2
            pl.BlockSpec((1, fc2), const),                 # wq row
            pl.BlockSpec((1, 1), const),                   # bq
        ],
        out_specs=pl.BlockSpec((tb, 1), lambda i: (i, 0)),
        compiler_params=compiler_params,
        cost_estimate=pl.CostEstimate(
            flops=flops, transcendentals=0, bytes_accessed=bytes_accessed),
    )(x, prepared["w1"], prepared["b1"], prepared["w2"], prepared["b2"],
      prepared["wq_row"], prepared["bq"])

    return q[:B]


def critic_forward_ref(state, action, params):
    """Pure-JAX f32 reference (mirrors torch forward exactly)."""
    x = jnp.concatenate([state, action], axis=1)
    h1 = jnp.maximum(x @ params["w1"] + params["b1"], 0.0)
    h2 = jnp.maximum(h1 @ params["w2"] + params["b2"], 0.0)
    return h2 @ params["wq"] + params["bq"]


# ---------------------------------------------------------------------------
# Demo / correctness check
# ---------------------------------------------------------------------------
if __name__ == "__main__":
    key = jax.random.PRNGKey(0)
    k_param, k_state, k_action = jax.random.split(key, 3)

    batch = 2
    input_dims = (8,)
    n_actions = 2

    params = init_critic_params(k_param, input_dims, n_actions)
    prepared = prepare_critic_params(params, input_dims[0], n_actions)

    state = jax.random.normal(k_state, (batch, input_dims[0]), jnp.float32)
    action = jax.random.normal(k_action, (batch, n_actions), jnp.float32)

    q = critic_forward(state, action, prepared)
    q = jax.block_until_ready(q)

    q_ref = critic_forward_ref(state, action, params)
    assert q.shape == (batch, 1), q.shape
    # bf16 operands with f32 accumulation -> small drift vs. f32 reference.
    assert jnp.allclose(q, q_ref, atol=5e-2, rtol=5e-2), (q, q_ref)

    # Exercise a larger, non-tile-aligned batch to cover the multi-tile path.
    k_s2, k_a2 = jax.random.split(k_state)
    state2 = jax.random.normal(k_s2, (300, input_dims[0]), jnp.float32)
    action2 = jax.random.normal(k_a2, (300, n_actions), jnp.float32)
    q2 = jax.block_until_ready(critic_forward(state2, action2, prepared))
    q2_ref = critic_forward_ref(state2, action2, params)
    assert q2.shape == (300, 1), q2.shape
    assert jnp.allclose(q2, q2_ref, atol=5e-2, rtol=5e-2)

    print("KERNEL_OK")
</pallas_src>

<mosaic_0001>
module attributes {stable_mosaic.version = 11 : i64} {
  func.func @_critic_kernel(%arg0: i32, %arg1: memref<16x16xbf16, #tpu.memory_space<vmem>>, %arg2: memref<16x256xbf16, #tpu.memory_space<vmem>>, %arg3: memref<1x256xf32, #tpu.memory_space<vmem>>, %arg4: memref<256x256xbf16, #tpu.memory_space<vmem>>, %arg5: memref<1x256xf32, #tpu.memory_space<vmem>>, %arg6: memref<1x256xf32, #tpu.memory_space<vmem>>, %arg7: memref<1x1xf32, #tpu.memory_space<vmem>>, %arg8: memref<16x1xf32, #tpu.memory_space<vmem>>) attributes {dimension_semantics = [#tpu.dimension_semantics<parallel>], iteration_bounds = array<i64: 1>, scalar_prefetch = 0 : i64, scratch_operands = 0 : i64, tpu.core_type = #tpu.core_type<tc>, window_params = [{transform_indices = @transform_0, window_bounds = array<i64: 16, 16>}, {pipeline_mode = #tpu.pipeline_mode<synchronous>, transform_indices = @transform_1, window_bounds = array<i64: 16, 256>}, {pipeline_mode = #tpu.pipeline_mode<synchronous>, transform_indices = @transform_2, window_bounds = array<i64: 1, 256>}, {pipeline_mode = #tpu.pipeline_mode<synchronous>, transform_indices = @transform_3, window_bounds = array<i64: 256, 256>}, {pipeline_mode = #tpu.pipeline_mode<synchronous>, transform_indices = @transform_4, window_bounds = array<i64: 1, 256>}, {pipeline_mode = #tpu.pipeline_mode<synchronous>, transform_indices = @transform_5, window_bounds = array<i64: 1, 256>}, {pipeline_mode = #tpu.pipeline_mode<synchronous>, transform_indices = @transform_6, window_bounds = array<i64: 1, 1>}, {transform_indices = @transform_7, window_bounds = array<i64: 16, 1>}]} {
    %c0 = arith.constant 0 : index
    %c0_0 = arith.constant 0 : index
    %0 = vector.load %arg1[%c0, %c0_0] : memref<16x16xbf16, #tpu.memory_space<vmem>>, vector<16x16xbf16>
    %c0_1 = arith.constant 0 : index
    %c0_2 = arith.constant 0 : index
    %1 = vector.load %arg2[%c0_1, %c0_2] : memref<16x256xbf16, #tpu.memory_space<vmem>>, vector<16x256xbf16>
    %cst = arith.constant dense<0.000000e+00> : vector<16x256xf32>
    %2 = tpu.matmul %0, %1, %cst {dimension_numbers = #tpu.dot_dimension_numbers<[1], [0], [0], [1], [0, 0, 1, 1], [], []>} : vector<16x16xbf16>, vector<16x256xbf16>, vector<16x256xf32> -> vector<16x256xf32>
    %c0_3 = arith.constant 0 : index
    %c0_4 = arith.constant 0 : index
    %3 = vector.load %arg3[%c0_3, %c0_4] : memref<1x256xf32, #tpu.memory_space<vmem>>, vector<1x256xf32>
    %4 = vector.broadcast %3 : vector<1x256xf32> to vector<16x256xf32>
    %5 = arith.addf %2, %4 : vector<16x256xf32>
    %cst_5 = arith.constant 0.000000e+00 : f32
    %6 = vector.broadcast %cst_5 : f32 to vector<16x256xf32>
    %7 = arith.maximumf %5, %6 : vector<16x256xf32>
    %8 = arith.truncf %7 : vector<16x256xf32> to vector<16x256xbf16>
    %c0_6 = arith.constant 0 : index
    %c0_7 = arith.constant 0 : index
    %9 = vector.load %arg4[%c0_6, %c0_7] : memref<256x256xbf16, #tpu.memory_space<vmem>>, vector<256x256xbf16>
    %cst_8 = arith.constant dense<0.000000e+00> : vector<16x256xf32>
    %10 = tpu.matmul %8, %9, %cst_8 {dimension_numbers = #tpu.dot_dimension_numbers<[1], [0], [0], [1], [0, 0, 1, 1], [], []>} : vector<16x256xbf16>, vector<256x256xbf16>, vector<16x256xf32> -> vector<16x256xf32>
    %c0_9 = arith.constant 0 : index
    %c0_10 = arith.constant 0 : index
    %11 = vector.load %arg5[%c0_9, %c0_10] : memref<1x256xf32, #tpu.memory_space<vmem>>, vector<1x256xf32>
    %12 = vector.broadcast %11 : vector<1x256xf32> to vector<16x256xf32>
    %13 = arith.addf %10, %12 : vector<16x256xf32>
    %cst_11 = arith.constant 0.000000e+00 : f32
    %14 = vector.broadcast %cst_11 : f32 to vector<16x256xf32>
    %15 = arith.maximumf %13, %14 : vector<16x256xf32>
    %c0_12 = arith.constant 0 : index
    %c0_13 = arith.constant 0 : index
    %16 = vector.load %arg6[%c0_12, %c0_13] : memref<1x256xf32, #tpu.memory_space<vmem>>, vector<1x256xf32>
    %17 = vector.broadcast %16 : vector<1x256xf32> to vector<16x256xf32>
    %18 = arith.mulf %15, %17 : vector<16x256xf32>
    %cst_14 = arith.constant dense<0.000000e+00> : vector<16xf32>
    %19 = vector.multi_reduction <add>, %18, %cst_14 [1] : vector<16x256xf32> to vector<16xf32>
    %20 = vector.shape_cast %19 : vector<16xf32> to vector<16x1xf32>
    %c0_15 = arith.constant 0 : index
    %c0_16 = arith.constant 0 : index
    %21 = vector.load %arg7[%c0_15, %c0_16] : memref<1x1xf32, #tpu.memory_space<vmem>>, vector<1x1xf32>
    %22 = vector.broadcast %21 : vector<1x1xf32> to vector<16x1xf32>
    %23 = arith.addf %20, %22 : vector<16x1xf32>
    %c0_17 = arith.constant 0 : index
    %c0_18 = arith.constant 0 : index
    %24 = vector.load %arg8[%c0_17, %c0_18] : memref<16x1xf32, #tpu.memory_space<vmem>>, vector<16x1xf32>
    tpu.vector_store %arg8[%c0_17, %c0_18], %23 {strides = array<i32>} : memref<16x1xf32, #tpu.memory_space<vmem>>, vector<16x1xf32>,
    return
  }
  func.func @transform_0(%arg0: i32) -> (i32, i32) {
    %c0_i32 = arith.constant 0 : i32
    %c0_i32_0 = arith.constant 0 : i32
    return %arg0, %c0_i32 : i32, i32
  }
  func.func @transform_1(%arg0: i32) -> (i32, i32) {
    %c0_i32 = arith.constant 0 : i32
    %c0_i32_0 = arith.constant 0 : i32
    %c0_i32_1 = arith.constant 0 : i32
    return %c0_i32, %c0_i32_0 : i32, i32
  }
  func.func @transform_2(%arg0: i32) -> (i32, i32) {
    %c0_i32 = arith.constant 0 : i32
    %c0_i32_0 = arith.constant 0 : i32
    %c0_i32_1 = arith.constant 0 : i32
    return %c0_i32, %c0_i32_0 : i32, i32
  }
  func.func @transform_3(%arg0: i32) -> (i32, i32) {
    %c0_i32 = arith.constant 0 : i32
    %c0_i32_0 = arith.constant 0 : i32
    %c0_i32_1 = arith.constant 0 : i32
    return %c0_i32, %c0_i32_0 : i32, i32
  }
  func.func @transform_4(%arg0: i32) -> (i32, i32) {
    %c0_i32 = arith.constant 0 : i32
    %c0_i32_0 = arith.constant 0 : i32
    %c0_i32_1 = arith.constant 0 : i32
    return %c0_i32, %c0_i32_0 : i32, i32
  }
  func.func @transform_5(%arg0: i32) -> (i32, i32) {
    %c0_i32 = arith.constant 0 : i32
    %c0_i32_0 = arith.constant 0 : i32
    %c0_i32_1 = arith.constant 0 : i32
    return %c0_i32, %c0_i32_0 : i32, i32
  }
  func.func @transform_6(%arg0: i32) -> (i32, i32) {
    %c0_i32 = arith.constant 0 : i32
    %c0_i32_0 = arith.constant 0 : i32
    %c0_i32_1 = arith.constant 0 : i32
    return %c0_i32, %c0_i32_0 : i32, i32
  }
  func.func @transform_7(%arg0: i32) -> (i32, i32) {
    %c0_i32 = arith.constant 0 : i32
    %c0_i32_0 = arith.constant 0 : i32
    return %arg0, %c0_i32 : i32, i32
  }
}

</mosaic_0001>

<bundles_post_ra>
// kernel: critic_forward.1
= control target key start
LH: loop header
LB: loop body
LE: loop exit
PB: predicated region body
PF: predicated region fallthrough
CT: control target
= control target key end

     0   :  { %s606_s0 = inlined_call_operand.vmem [shape: bf16[16,16], index: 0, kind: input, shape index: {}]   ;;  %s607_s1 = inlined_call_operand.vmem [shape: bf16[16,256], index: 1, kind: input, shape index: {}]   ;;  %s608_s2 = inlined_call_operand.vmem [shape: f32[1,256], index: 2, kind: input, shape index: {}]   ;;  %s609_s3 = inlined_call_operand.hbm [shape: bf16[256,256], index: 3, kind: input, shape index: {}]   ;;  %s610_s4 = inlined_call_operand.vmem [shape: f32[1,256], index: 4, kind: input, shape index: {}]   ;;  %s611_s5 = inlined_call_operand.vmem [shape: f32[1,256], index: 5, kind: input, shape index: {}]   ;;  %s612_s6 = inlined_call_operand.<no memory space> [shape: f32[1,1], index: 6, kind: input, shape index: {}]   ;;  %s613_s7 = inlined_call_operand.vmem [shape: f32[16,1], index: 7, kind: output, shape index: {}]  }
   0x1   :  { %v12_v0 = vstv %s612_s6 }
   0x2   :  { %13 = vst [vmem:[#allocation2] sm:$0x1] %v12_v0 }
   0x3   :  { %14 = vsyncpa [#allocation4], 0  ;;  %s532_s26 = smov [#allocation3]  }
   0x4   :  { %s26_s27 = sshll.u32 %s532_s26, 4  ;;  %s27_s27 = int_to_ptr.vmem [resolvable:$true] %s26_s27 }
   0x5   :  { %s518_s28 = scalar_lea.vmem %s27_s27, 4096  ;;  %p523_p1 = scmp.lt.s32.totalorder %s27_s27, %s27_s27 }
   0x6   :  { %p519_p0 = scmp.ne.s32.totalorder %s27_s27, %s518_s28  ;;  %p524_p2 = scmp.lt.s32.totalorder %s518_s28, %s518_s28 }
   0x8   :  { %p525_p3 = por %p524_p2, %p523_p1 }
   0xa   :  { %p526_p4 = pnand %p525_p3, %p519_p0 }
   0xc   :  { %529 = shalt.err (!%p526_p4)
}
   0xd   :  { %s533_s29 = smov 128   ;;  %s534_s30 = smov 8  }
   0xe   :  { %32 = dma.hbm_to_vmem [thread:$0]  %s609_s3, 4096, %s27_s27, [#allocation4], %s533_s29, %s533_s29, %s534_s30  }
   0xf   :  { %530 = dma.done.wait [#allocation4], 4096  }
  0x10   :  { %531 = vsyncadd [#allocation4], 4294963200  ;;  %v535_v1 = vmov 0   ;;  %v458_v2 = vld [vmem:[%s607_s1 + $0x4] ss:$8 sps:$4 sm:$0xff]   ;;  %vm74_vm0 = vcmask 130048   ;;  %v49_v37 = vlaneseq }
  0x11   :  { %110 = vmatprep.mubr.bf16.mxu0 %v535_v1  ;;  %v460_v3 = vld [vmem:[%s607_s1] ss:$8 sps:$4 sm:$0xff]   ;;  %92 = vmatprep.subr.bf16.mxu0 %v458_v2  ;;  %v464_v6 = vld [vmem:[#allocation3 + $0x70] ss:$8 sps:$4 sm:$0xff]   ;;  %vm409_vm1 = vcmask 7168  }
  0x12   :  { %v461_v4 = vld [vmem:[%s606_s0] sm:$0xff]   ;;  %93 = vmatpush1.bf16.msra.mxu0 %v460_v3  ;;  %v470_v10 = vld [vmem:[#allocation3 + $0x50] ss:$8 sps:$4 sm:$0xff]   ;;  %v50_v38 = vshrl.u32 %v49_v37, 7 }
  0x13   :  { %v462_v5 = vld [vmem:[#allocation3 + $0x74] ss:$8 sps:$4 sm:$0xff]   ;;  %v465_v7 = vld [vmem:[#allocation3 + $0x64] ss:$8 sps:$4 sm:$0xff]   ;;  %v467_v8 = vld [vmem:[#allocation3 + $0x60] ss:$8 sps:$4 sm:$0xff]  }
  0x14   :  { %331 = vmatprep.subr.bf16.mxu1 %v462_v5  ;;  %v468_v9 = vld [vmem:[#allocation3 + $0x54] ss:$8 sps:$4 sm:$0xff]   ;;  %v471_v11 = vld [vmem:[#allocation3 + $0x44] ss:$8 sps:$4 sm:$0xff]   ;;  %v473_v12 = vld [vmem:[#allocation3 + $0x40] ss:$8 sps:$4 sm:$0xff]  }
  0x15   :  { %420 = vmatmul.mubr.msk.bf16.vlgmr.msra.gmra.mxu0 %vm74_vm0, %v461_v4  ;;  %332 = vmatpush1.bf16.msra.mxu1 %v464_v6  ;;  %v474_v13 = vld [vmem:[#allocation3 + $0x34] ss:$8 sps:$4 sm:$0xff]   ;;  %v476_v14 = vld [vmem:[#allocation3 + $0x30] ss:$8 sps:$4 sm:$0xff]   ;;  %v477_v15 = vld [vmem:[#allocation3 + $0x24] ss:$8 sps:$4 sm:$0xff]  }
  0x16   :  { %333 = vmatprep.subr.bf16.mxu1 %v465_v7  ;;  %v479_v16 = vld [vmem:[#allocation3 + $0x20] ss:$8 sps:$4 sm:$0xff]   ;;  %v480_v17 = vld [vmem:[#allocation3 + $0x14] ss:$8 sps:$4 sm:$0xff]   ;;  %v482_v18 = vld [vmem:[#allocation3 + $0x10] ss:$8 sps:$4 sm:$0xff]  }
  0x17   :  { %v483_v19 = vld [vmem:[#allocation3 + $0x4] ss:$8 sps:$4 sm:$0xff]   ;;  %v485_v20 = vld [vmem:[#allocation3] ss:$8 sps:$4 sm:$0xff]   ;;  %v486_v21 = vld [vmem:[#allocation3 + $0xf4] ss:$8 sps:$4 sm:$0xff]  }
  0x18   :  { %v488_v22 = vld [vmem:[#allocation3 + $0xf0] ss:$8 sps:$4 sm:$0xff]   ;;  %v489_v23 = vld [vmem:[#allocation3 + $0xe4] ss:$8 sps:$4 sm:$0xff]   ;;  %v491_v24 = vld [vmem:[#allocation3 + $0xe0] ss:$8 sps:$4 sm:$0xff]  }
  0x19   :  { %334 = vmatpush1.bf16.msra.mxu1 %v467_v8  ;;  %v492_v25 = vld [vmem:[#allocation3 + $0xd4] ss:$8 sps:$4 sm:$0xff]   ;;  %v494_v26 = vld [vmem:[#allocation3 + $0xd0] ss:$8 sps:$4 sm:$0xff]   ;;  %v495_v27 = vld [vmem:[#allocation3 + $0xc4] ss:$8 sps:$4 sm:$0xff]  }
  0x1a   :  { %335 = vmatprep.subr.bf16.mxu1 %v468_v9  ;;  %v497_v28 = vld [vmem:[#allocation3 + $0xc0] ss:$8 sps:$4 sm:$0xff]   ;;  %v498_v29 = vld [vmem:[#allocation3 + $0xb4] ss:$8 sps:$4 sm:$0xff]   ;;  %v500_v30 = vld [vmem:[#allocation3 + $0xb0] ss:$8 sps:$4 sm:$0xff]  }
  0x1b   :  { %v501_v31 = vld [vmem:[#allocation3 + $0xa4] ss:$8 sps:$4 sm:$0xff]   ;;  %v503_v32 = vld [vmem:[#allocation3 + $0xa0] ss:$8 sps:$4 sm:$0xff]   ;;  %v504_v33 = vld [vmem:[#allocation3 + $0x94] ss:$8 sps:$4 sm:$0xff]  }
  0x1c   :  { %v506_v34 = vld [vmem:[#allocation3 + $0x90] ss:$8 sps:$4 sm:$0xff]   ;;  %v507_v35 = vld [vmem:[#allocation3 + $0x84] ss:$8 sps:$4 sm:$0xff]   ;;  %v509_v36 = vld [vmem:[#allocation3 + $0x80] ss:$8 sps:$4 sm:$0xff]  }
  0x1d   :  { %336 = vmatpush1.bf16.msra.mxu1 %v470_v10  ;;  %v55_v39 = vsub.s32 1, %v50_v38  ;;  %v51_v40 = vsub.s32 0, %v50_v38  ;;  %v47_v41 = vld [vmem:[%s608_s2] sm:$0x3] }
  0x1e   :  { %337 = vmatprep.subr.bf16.mxu1 %v471_v11  ;;  %v159_v58 = vld [vmem:[%s610_s4] sm:$0x3] }
  0x1f   :  { %v56_v43 = vrot.slane %v47_v41, %v55_v39  ;;  %v52_v44 = vrot.slane %v47_v41, %v51_v40  ;;  %v164_v59 = vrot.slane %v159_v58, %v51_v40  ;;  %v168_v60 = vrot.slane %v159_v58, %v55_v39  ;;  %v378_v62 = vld [vmem:[%s611_s5] sm:$0x3] }
  0x20   :  { %v383_v3 = vrot.slane %v378_v62, %v51_v40  ;;  %v387_v4 = vrot.slane %v378_v62, %v55_v39 }
  0x21   :  { %338 = vmatpush1.bf16.msra.mxu1 %v473_v12 }
  0x22   :  { %339 = vmatprep.subr.bf16.mxu1 %v474_v13 }
  0x25   :  { %340 = vmatpush1.bf16.msra.mxu1 %v476_v14 }
  0x26   :  { %341 = vmatprep.subr.bf16.mxu1 %v477_v15 }
  0x29   :  { %342 = vmatpush1.bf16.msra.mxu1 %v479_v16 }
  0x2a   :  { %343 = vmatprep.subr.bf16.mxu1 %v480_v17 }
  0x2d   :  { %344 = vmatpush1.bf16.msra.mxu1 %v482_v18  ;;  %v453_v18 = vld [vmem:[#allocation2] ss:$0 sm:$0xff] }
  0x2e   :  { %345 = vmatprep.subr.bf16.mxu1 %v483_v19 }
  0x31   :  { %346 = vmatpush1.bf16.msra.mxu1 %v485_v20 }
  0x32   :  { %347 = vmatprep.subr.bf16.mxu1 %v486_v21 }
  0x35   :  { %348 = vmatpush2.bf16.msra.mxu1 %v488_v22 }
  0x36   :  { %349 = vmatprep.subr.bf16.mxu1 %v489_v23 }
  0x39   :  { %350 = vmatpush2.bf16.msra.mxu1 %v491_v24 }
  0x3a   :  { %351 = vmatprep.subr.bf16.mxu1 %v492_v25 }
  0x3d   :  { %352 = vmatpush2.bf16.msra.mxu1 %v494_v26 }
  0x3e   :  { %353 = vmatprep.subr.bf16.mxu1 %v495_v27 }
  0x41   :  { %354 = vmatpush2.bf16.msra.mxu1 %v497_v28 }
  0x42   :  { %355 = vmatprep.subr.bf16.mxu1 %v498_v29 }
  0x45   :  { %356 = vmatpush2.bf16.msra.mxu1 %v500_v30 }
  0x46   :  { %357 = vmatprep.subr.bf16.mxu1 %v501_v31 }
  0x49   :  { %358 = vmatpush2.bf16.msra.mxu1 %v503_v32 }
  0x4a   :  { %359 = vmatprep.subr.bf16.mxu1 %v504_v33 }
  0x4d   :  { %360 = vmatpush2.bf16.msra.mxu1 %v506_v34 }
  0x4e   :  { %361 = vmatprep.subr.bf16.mxu1 %v507_v35 }
  0x51   :  { %362 = vmatpush2.bf16.msra.mxu1 %v509_v36 }
  0xd5   :  { %v112_v42 = vpop.f32.mrf.mxu0 }
  0xd6   :  { %v113_v49 = vadd.f32 %v112_v42, %v52_v44 }
  0xd7   :  { %v114_v45 = vpop.f32.mrf.mxu0 }
  0xd8   :  { %v115_v47 = vadd.f32 %v114_v45, %v56_v43  ;;  %v121_v55 = vmax.f32 %v113_v49, 0.0 }
  0xd9   :  { %v116_v46 = vpop.f32.mrf.mxu0 }
  0xda   :  { %v117_v48 = vadd.f32 %v116_v46, %v52_v44  ;;  %v122_v53 = vmax.f32 %v115_v47, 0.0 }
  0xdb   :  { %v118_v50 = vpop.f32.mrf.mxu0 }
  0xdc   :  { %v119_v51 = vadd.f32 %v118_v50, %v56_v43  ;;  %v123_v52 = vmax.f32 %v117_v48, 0.0 }
  0xde   :  { %v124_v54 = vmax.f32 %v119_v51, 0.0  ;;  %v125_v57 = vpack.c.bf16 %v123_v52, %v121_v55 }
  0xe0   :  { %v126_v56 = vpack.c.bf16 %v124_v54, %v122_v53 }
  0xe2   :  { %363 = vmatprep.mubr.bf16.mxu1 %v126_v56 }
  0xe3   :  { %364 = vmatmul.mubr.bf16.vlgmr.msra.gmra.mxu1 %v125_v57 }
 0x1a3   :  { %v365_v61 = vpop.f32.mrf.mxu1 }
 0x1a4   :  { %v366_v63 = vadd.f32 %v365_v61, %v164_v59 }
 0x1a5   :  { %v367_v0 = vpop.f32.mrf.mxu1 }
 0x1a6   :  { %v374_v1 = vmax.f32 %v366_v63, 0.0  ;;  %v368_v2 = vadd.f32 %v367_v0, %v168_v60 }
 0x1a7   :  { %v369_v5 = vpop.f32.mrf.mxu1 }
 0x1a8   :  { %v375_v6 = vmax.f32 %v368_v2, 0.0  ;;  %v370_v7 = vadd.f32 %v369_v5, %v164_v59  ;;  %v390_v11 = vmul.f32 %v383_v3, %v374_v1 }
 0x1a9   :  { %v371_v8 = vpop.f32.mrf.mxu1 }
 0x1aa   :  { %v376_v9 = vmax.f32 %v370_v7, 0.0  ;;  %v372_v10 = vadd.f32 %v371_v8, %v168_v60  ;;  %v391_v12 = vmul.f32 %v387_v4, %v375_v6 }
 0x1ac   :  { %v377_v13 = vmax.f32 %v372_v10, 0.0  ;;  %v394_v14 = vadd.f32 %v391_v12, %v390_v11  ;;  %v392_v15 = vmul.f32 %v383_v3, %v376_v9 }
 0x1ae   :  { %v393_v16 = vmul.f32 %v387_v4, %v377_v13  ;;  %395 = vadd.xlane.f32.xlu0 %v394_v14 }
 0x1b0   :  { %v397_v17 = vadd.f32 %v393_v16, %v392_v15 }
 0x1b2   :  { %398 = vadd.xlane.f32.xlu0 %v397_v17 }
 0x237   :  { %v396_v19 = vpop.xlane.xlu0 %395 }
 0x238   :  { %v407_v20 = vadd.f32 %v453_v18, %v396_v19 }
 0x23a   :  { %410 = vst.msk [vmem:[%s613_s7] sm:$0xff] %vm409_vm1, %v407_v20 }
 0x23b   :  { %v399_v21 = vpop.xlane.xlu0 %398 }
 0x23c   :  { %v408_v22 = vadd.f32 %v453_v18, %v399_v21 }
 0x23e   :  { %411 = vst.msk [vmem:[%s613_s7 + $0x8] sm:$0xff] %vm409_vm1, %v408_v22 }
 0x23f   :  { %416 = vsyncpa [#allocation4], 1 }

</bundles_post_ra>
